<compile_context>
chip_gen: v7x
topology: tpu7x:2x2x1
jax: 0.10.0
libtpu: 0.0.40
codegen_flags: <defaults>
</compile_context>

<pallas_src>
import math

import jax
import jax.numpy as jnp
from jax.experimental import pallas as pl
from jax.experimental.pallas import tpu as pltpu


# ----------------------------------------------------------------------------
# Fused kernel: 3x GCN layer (dense normalized-adjacency matmul), mean-pool
# expressed as a (B, N) @ (N, H) matmul, then the final Linear.
# All intermediates stay in VMEM; MXU inputs are bf16, accumulation is f32.
# ----------------------------------------------------------------------------
def _gcn_fused_kernel(x_ref, adj_ref, pool_ref, w_ref, b_ref, wl_ref, bl_ref,
                      out_ref):
    bf16 = jnp.bfloat16
    f32 = jnp.float32

    adj = adj_ref[...]                     # (N, N) bf16
    w_all = w_ref[...]                     # (F + 2H, H) bf16  (W1 | W2 | W3)
    b_all = b_ref[...]                     # (3, H) f32

    F = x_ref.shape[1]
    H = w_ref.shape[1]
    w1 = w_all[:F]                         # (F, H)
    w2 = w_all[F:F + H]                    # (H, H)
    w3 = w_all[F + H:F + 2 * H]            # (H, H)

    def mm(a, b):
        return jnp.dot(a, b, preferred_element_type=f32)

    # layer 1: relu((A_hat @ x) @ W1 + b1)    -- re-associated since F < H
    ax = mm(adj, x_ref[...].astype(bf16))                     # (N, F) f32
    h = mm(ax.astype(bf16), w1) + b_all[0]                    # (N, H) f32
    h = jnp.maximum(h, 0.0)

    # layer 2: relu(A_hat @ (h @ W2) + b2)
    hw = mm(h.astype(bf16), w2)
    h = mm(adj, hw.astype(bf16)) + b_all[1]
    h = jnp.maximum(h, 0.0)

    # layer 3: A_hat @ (h @ W3) + b3           (no relu)
    hw = mm(h.astype(bf16), w3)
    h = mm(adj, hw.astype(bf16)) + b_all[2]

    # global_mean_pool as a (B, N) matmul, fused with the final Linear.
    # TODO(synk): F.dropout(p=0.5) treated as identity (inference mode).
    pooled = mm(pool_ref[...].astype(bf16), h.astype(bf16))   # (B, H) f32
    out_ref[...] = mm(pooled.astype(bf16), wl_ref[...]) + bl_ref[...]


# ----------------------------------------------------------------------------
# Graph preprocessing (done ONCE per static graph, outside the hot path):
#   * dense symmetrically-normalized adjacency (PyG gcn_norm, self-loop w=1),
#     built directly in bf16 (MXU-native, halves VMEM/HBM footprint),
#   * mean-pool matrix P (B, N) with P[g, i] = 1/|graph g| if batch[i] == g.
# ----------------------------------------------------------------------------
def precompute_graph(edge_index, edge_weight, batch, num_nodes, num_graphs):
    N = num_nodes
    row, col = edge_index[0], edge_index[1]
    loop = jnp.arange(N, dtype=row.dtype)
    row_f = jnp.concatenate([row, loop])
    col_f = jnp.concatenate([col, loop])
    w_f = jnp.concatenate([edge_weight.astype(jnp.float32),
                           jnp.ones((N,), jnp.float32)])      # self-loop weight 1
    deg = jnp.zeros((N,), jnp.float32).at[col_f].add(w_f)
    dinv = jnp.where(deg > 0, jax.lax.rsqrt(deg), 0.0)
    norm = dinv[row_f] * w_f * dinv[col_f]
    # adj[i, j] = normalized weight of message j -> i (source=row, target=col)
    adj = jnp.zeros((N, N), jnp.float32).at[col_f, row_f].add(norm)
    adj = adj.astype(jnp.bfloat16)

    onehot = (batch[None, :] == jnp.arange(num_graphs)[:, None]).astype(jnp.float32)
    counts = jnp.maximum(onehot.sum(axis=1, keepdims=True), 1.0)
    pool = onehot / counts
    return adj, pool


def pack_params(params):
    """Pack the 3 GCN weights / biases into two operands (fewer DMAs)."""
    w_packed = jnp.concatenate([params["w1"], params["w2"], params["w3"]],
                               axis=0).astype(jnp.bfloat16)          # (F+2H, H)
    b_packed = jnp.concatenate([params["b1"], params["b2"], params["b3"]],
                               axis=0).astype(jnp.float32)           # (3, H)
    wl = params["wl"].astype(jnp.bfloat16)                           # (H, C)
    bl = params["bl"].astype(jnp.float32)                            # (1, C)
    return w_packed, b_packed, wl, bl


def gcn_forward(packed, x, adj, pool):
    """Hot-path forward: one fused pallas_call. adj/pool are precomputed."""
    w_packed, b_packed, wl, bl = packed
    N, F = x.shape
    H = w_packed.shape[1]
    C = wl.shape[1]
    B = pool.shape[0]

    flops = int(2 * (N * N * F + N * F * H                  # layer 1 (re-assoc)
                     + 2 * (N * H * H + N * N * H)          # layers 2, 3
                     + B * N * H + B * H * C))              # pool + linear
    bytes_accessed = int(4 * N * F + 2 * N * N + 4 * B * N
                         + 2 * (F + 2 * H) * H + 4 * 3 * H
                         + 2 * H * C + 4 * C + 4 * B * C)

    vmem_spec = pl.BlockSpec(memory_space=pltpu.MemorySpace.VMEM)

    return pl.pallas_call(
        _gcn_fused_kernel,
        out_shape=jax.ShapeDtypeStruct((B, C), jnp.float32),
        in_specs=[vmem_spec] * 7,
        out_specs=vmem_spec,
        compiler_params=pltpu.CompilerParams(
            # whole fused working set (< 100 KB here) must fit; explicit limit
            # keeps the single-block design honest across v5e/v6e/v7x.
            vmem_limit_bytes=32 * 1024 * 1024),
        cost_estimate=pl.CostEstimate(flops=flops, transcendentals=0,
                                      bytes_accessed=bytes_accessed),
    )(x, adj, pool, w_packed, b_packed, wl, bl)


# ----------------------------------------------------------------------------
# Pure-JAX references for correctness checks.
# ----------------------------------------------------------------------------
def gcn_reference_bf16(params, x, adj_bf16, pool):
    """Same math / same bf16 casts as the kernel (tight tolerance)."""
    bf = jnp.bfloat16

    def mm(a, b):
        return jnp.dot(a.astype(bf), b.astype(bf),
                       preferred_element_type=jnp.float32)

    h = mm(mm(adj_bf16, x), params["w1"]) + params["b1"]
    h = jnp.maximum(h, 0.0)
    h = mm(adj_bf16, mm(h, params["w2"])) + params["b2"]
    h = jnp.maximum(h, 0.0)
    h = mm(adj_bf16, mm(h, params["w3"])) + params["b3"]
    return mm(mm(pool, h), params["wl"]) + params["bl"]


def gcn_reference_f32(params, x, adj_f32, pool):
    """Full-f32 dense reference (loose tolerance vs bf16 MXU inputs)."""
    h = jnp.maximum(adj_f32 @ (x @ params["w1"]) + params["b1"], 0.0)
    h = jnp.maximum(adj_f32 @ (h @ params["w2"]) + params["b2"], 0.0)
    h = adj_f32 @ (h @ params["w3"]) + params["b3"]
    return (pool @ h) @ params["wl"] + params["bl"]


# ----------------------------------------------------------------------------
# Deterministic parameter init (glorot-style uniform, zero bias like PyG)
# ----------------------------------------------------------------------------
def init_params(key, num_node_features, hidden_channels, num_classes):
    keys = iter(jax.random.split(key, 16))

    def glorot(shape):
        bound = math.sqrt(6.0 / (shape[0] + shape[1]))
        return jax.random.uniform(next(keys), shape, jnp.float32, -bound, bound)

    def lin_bias(shape, fan_in):
        bound = 1.0 / math.sqrt(fan_in)
        return jax.random.uniform(next(keys), shape, jnp.float32, -bound, bound)

    F, H, C = num_node_features, hidden_channels, num_classes
    return {
        "w1": glorot((F, H)), "b1": jnp.zeros((1, H), jnp.float32),
        "w2": glorot((H, H)), "b2": jnp.zeros((1, H), jnp.float32),
        "w3": glorot((H, H)), "b3": jnp.zeros((1, H), jnp.float32),
        "wl": glorot((H, C)), "bl": lin_bias((1, C), H),
    }


# ----------------------------------------------------------------------------
if __name__ == "__main__":
    num_node_features = 16
    hidden_channels = 32
    num_classes = 2
    nodes_per_graph = 32
    num_graphs = 2
    N = nodes_per_graph * num_graphs
    edges_per_graph = 128

    root = jax.random.PRNGKey(0)
    pkey, xkey, ekey, wkey = jax.random.split(root, 4)
    params = init_params(pkey, num_node_features, hidden_channels, num_classes)
    packed = pack_params(params)

    # node features
    x = jax.random.normal(xkey, (N, num_node_features), jnp.float32)

    # random edges, kept within each graph
    ek = jax.random.split(ekey, num_graphs)
    rows, cols = [], []
    for g in range(num_graphs):
        rc = jax.random.randint(ek[g], (2, edges_per_graph), 0, nodes_per_graph,
                                dtype=jnp.int32) + g * nodes_per_graph
        rows.append(rc[0]); cols.append(rc[1])
    edge_index = jnp.stack([jnp.concatenate(rows), jnp.concatenate(cols)], axis=0)
    edge_weight = jax.random.uniform(wkey, (edge_index.shape[1],), jnp.float32,
                                     0.5, 1.5)
    batch = jnp.repeat(jnp.arange(num_graphs, dtype=jnp.int32), nodes_per_graph)

    # graph preprocessing done once (static graph) -> not in the hot path
    adj, pool = precompute_graph(edge_index, edge_weight, batch, N, num_graphs)

    out = gcn_forward(packed, x, adj, pool)
    out = jax.block_until_ready(out)
    assert out.shape == (num_graphs, num_classes)

    # correctness: tight check vs a bf16-matched reference, loose vs full f32
    ref_bf16 = gcn_reference_bf16(params, x, adj, pool)
    assert jnp.allclose(out, ref_bf16, rtol=5e-3, atol=5e-3), (out, ref_bf16)

    ref_f32 = gcn_reference_f32(params, x, adj.astype(jnp.float32), pool)
    assert jnp.allclose(out, ref_f32, rtol=5e-2, atol=5e-2), (out, ref_f32)

    print("KERNEL_OK")
</pallas_src>

<mosaic_0001>
module attributes {stable_mosaic.version = 11 : i64} {
  func.func @_gcn_fused_kernel(%arg0: memref<64x16xf32, #tpu.memory_space<vmem>>, %arg1: memref<64x64xbf16, #tpu.memory_space<vmem>>, %arg2: memref<2x64xf32, #tpu.memory_space<vmem>>, %arg3: memref<80x32xbf16, #tpu.memory_space<vmem>>, %arg4: memref<3x32xf32, #tpu.memory_space<vmem>>, %arg5: memref<32x2xbf16, #tpu.memory_space<vmem>>, %arg6: memref<1x2xf32, #tpu.memory_space<vmem>>, %arg7: memref<2x2xf32, #tpu.memory_space<vmem>>) attributes {dimension_semantics = [], scalar_prefetch = 0 : i64, scratch_operands = 0 : i64, tpu.core_type = #tpu.core_type<tc>} {
    %c0 = arith.constant 0 : index
    %c0_0 = arith.constant 0 : index
    %0 = vector.load %arg1[%c0, %c0_0] : memref<64x64xbf16, #tpu.memory_space<vmem>>, vector<64x64xbf16>
    %c0_1 = arith.constant 0 : index
    %c0_2 = arith.constant 0 : index
    %1 = vector.load %arg3[%c0_1, %c0_2] : memref<80x32xbf16, #tpu.memory_space<vmem>>, vector<80x32xbf16>
    %c0_3 = arith.constant 0 : index
    %c0_4 = arith.constant 0 : index
    %2 = vector.load %arg4[%c0_3, %c0_4] : memref<3x32xf32, #tpu.memory_space<vmem>>, vector<3x32xf32>
    %3 = vector.extract_strided_slice %1 {offsets = [0, 0], sizes = [16, 32], strides = [1, 1]} : vector<80x32xbf16> to vector<16x32xbf16>
    %4 = vector.extract_strided_slice %1 {offsets = [16, 0], sizes = [32, 32], strides = [1, 1]} : vector<80x32xbf16> to vector<32x32xbf16>
    %5 = vector.extract_strided_slice %1 {offsets = [48, 0], sizes = [32, 32], strides = [1, 1]} : vector<80x32xbf16> to vector<32x32xbf16>
    %c0_5 = arith.constant 0 : index
    %c0_6 = arith.constant 0 : index
    %6 = vector.load %arg0[%c0_5, %c0_6] : memref<64x16xf32, #tpu.memory_space<vmem>>, vector<64x16xf32>
    %7 = arith.truncf %6 : vector<64x16xf32> to vector<64x16xbf16>
    %cst = arith.constant dense<0.000000e+00> : vector<64x16xf32>
    %8 = tpu.matmul %0, %7, %cst {dimension_numbers = #tpu.dot_dimension_numbers<[1], [0], [0], [1], [0, 0, 1, 1], [], []>} : vector<64x64xbf16>, vector<64x16xbf16>, vector<64x16xf32> -> vector<64x16xf32>
    %9 = arith.truncf %8 : vector<64x16xf32> to vector<64x16xbf16>
    %cst_7 = arith.constant dense<0.000000e+00> : vector<64x32xf32>
    %10 = tpu.matmul %9, %3, %cst_7 {dimension_numbers = #tpu.dot_dimension_numbers<[1], [0], [0], [1], [0, 0, 1, 1], [], []>} : vector<64x16xbf16>, vector<16x32xbf16>, vector<64x32xf32> -> vector<64x32xf32>
    %11 = vector.extract_strided_slice %2 {offsets = [0, 0], sizes = [1, 32], strides = [1, 1]} : vector<3x32xf32> to vector<1x32xf32>
    %12 = vector.shape_cast %11 : vector<1x32xf32> to vector<32xf32>
    %13 = vector.shape_cast %12 : vector<32xf32> to vector<1x32xf32>
    %14 = vector.broadcast %13 : vector<1x32xf32> to vector<64x32xf32>
    %15 = arith.addf %10, %14 : vector<64x32xf32>
    %cst_8 = arith.constant 0.000000e+00 : f32
    %16 = vector.broadcast %cst_8 : f32 to vector<64x32xf32>
    %17 = arith.maximumf %15, %16 : vector<64x32xf32>
    %18 = arith.truncf %17 : vector<64x32xf32> to vector<64x32xbf16>
    %cst_9 = arith.constant dense<0.000000e+00> : vector<64x32xf32>
    %19 = tpu.matmul %18, %4, %cst_9 {dimension_numbers = #tpu.dot_dimension_numbers<[1], [0], [0], [1], [0, 0, 1, 1], [], []>} : vector<64x32xbf16>, vector<32x32xbf16>, vector<64x32xf32> -> vector<64x32xf32>
    %20 = arith.truncf %19 : vector<64x32xf32> to vector<64x32xbf16>
    %cst_10 = arith.constant dense<0.000000e+00> : vector<64x32xf32>
    %21 = tpu.matmul %0, %20, %cst_10 {dimension_numbers = #tpu.dot_dimension_numbers<[1], [0], [0], [1], [0, 0, 1, 1], [], []>} : vector<64x64xbf16>, vector<64x32xbf16>, vector<64x32xf32> -> vector<64x32xf32>
    %22 = vector.extract_strided_slice %2 {offsets = [1, 0], sizes = [1, 32], strides = [1, 1]} : vector<3x32xf32> to vector<1x32xf32>
    %23 = vector.shape_cast %22 : vector<1x32xf32> to vector<32xf32>
    %24 = vector.shape_cast %23 : vector<32xf32> to vector<1x32xf32>
    %25 = vector.broadcast %24 : vector<1x32xf32> to vector<64x32xf32>
    %26 = arith.addf %21, %25 : vector<64x32xf32>
    %cst_11 = arith.constant 0.000000e+00 : f32
    %27 = vector.broadcast %cst_11 : f32 to vector<64x32xf32>
    %28 = arith.maximumf %26, %27 : vector<64x32xf32>
    %29 = arith.truncf %28 : vector<64x32xf32> to vector<64x32xbf16>
    %cst_12 = arith.constant dense<0.000000e+00> : vector<64x32xf32>
    %30 = tpu.matmul %29, %5, %cst_12 {dimension_numbers = #tpu.dot_dimension_numbers<[1], [0], [0], [1], [0, 0, 1, 1], [], []>} : vector<64x32xbf16>, vector<32x32xbf16>, vector<64x32xf32> -> vector<64x32xf32>
    %31 = arith.truncf %30 : vector<64x32xf32> to vector<64x32xbf16>
    %cst_13 = arith.constant dense<0.000000e+00> : vector<64x32xf32>
    %32 = tpu.matmul %0, %31, %cst_13 {dimension_numbers = #tpu.dot_dimension_numbers<[1], [0], [0], [1], [0, 0, 1, 1], [], []>} : vector<64x64xbf16>, vector<64x32xbf16>, vector<64x32xf32> -> vector<64x32xf32>
    %33 = vector.extract_strided_slice %2 {offsets = [2, 0], sizes = [1, 32], strides = [1, 1]} : vector<3x32xf32> to vector<1x32xf32>
    %34 = vector.shape_cast %33 : vector<1x32xf32> to vector<32xf32>
    %35 = vector.shape_cast %34 : vector<32xf32> to vector<1x32xf32>
    %36 = vector.broadcast %35 : vector<1x32xf32> to vector<64x32xf32>
    %37 = arith.addf %32, %36 : vector<64x32xf32>
    %c0_14 = arith.constant 0 : index
    %c0_15 = arith.constant 0 : index
    %38 = vector.load %arg2[%c0_14, %c0_15] : memref<2x64xf32, #tpu.memory_space<vmem>>, vector<2x64xf32>
    %39 = arith.truncf %38 : vector<2x64xf32> to vector<2x64xbf16>
    %40 = arith.truncf %37 : vector<64x32xf32> to vector<64x32xbf16>
    %cst_16 = arith.constant dense<0.000000e+00> : vector<2x32xf32>
    %41 = tpu.matmul %39, %40, %cst_16 {dimension_numbers = #tpu.dot_dimension_numbers<[1], [0], [0], [1], [0, 0, 1, 1], [], []>} : vector<2x64xbf16>, vector<64x32xbf16>, vector<2x32xf32> -> vector<2x32xf32>
    %42 = arith.truncf %41 : vector<2x32xf32> to vector<2x32xbf16>
    %c0_17 = arith.constant 0 : index
    %c0_18 = arith.constant 0 : index
    %43 = vector.load %arg5[%c0_17, %c0_18] : memref<32x2xbf16, #tpu.memory_space<vmem>>, vector<32x2xbf16>
    %cst_19 = arith.constant dense<0.000000e+00> : vector<2x2xf32>
    %44 = tpu.matmul %42, %43, %cst_19 {dimension_numbers = #tpu.dot_dimension_numbers<[1], [0], [0], [1], [0, 0, 1, 1], [], []>} : vector<2x32xbf16>, vector<32x2xbf16>, vector<2x2xf32> -> vector<2x2xf32>
    %c0_20 = arith.constant 0 : index
    %c0_21 = arith.constant 0 : index
    %45 = vector.load %arg6[%c0_20, %c0_21] : memref<1x2xf32, #tpu.memory_space<vmem>>, vector<1x2xf32>
    %46 = vector.broadcast %45 : vector<1x2xf32> to vector<2x2xf32>
    %47 = arith.addf %44, %46 : vector<2x2xf32>
    %c0_22 = arith.constant 0 : index
    %c0_23 = arith.constant 0 : index
    %48 = vector.load %arg7[%c0_22, %c0_23] : memref<2x2xf32, #tpu.memory_space<vmem>>, vector<2x2xf32>
    tpu.vector_store %arg7[%c0_22, %c0_23], %47 {strides = array<i32>} : memref<2x2xf32, #tpu.memory_space<vmem>>, vector<2x2xf32>,
    return
  }
}

</mosaic_0001>

<bundles_post_ra>
// kernel: tpu_custom_call.1
= control target key start
LH: loop header
LB: loop body
LE: loop exit
PB: predicated region body
PF: predicated region fallthrough
CT: control target
= control target key end

     0   :  { %vm79_vm0 = vcmask 523264   ;;  %s1132_s0 = inlined_call_operand.vmem [shape: f32[64,16], index: 0, kind: input, shape index: {}]   ;;  %s1133_s1 = inlined_call_operand.vmem [shape: bf16[64,64], index: 1, kind: input, shape index: {}]   ;;  %s1134_s2 = inlined_call_operand.vmem [shape: f32[2,64], index: 2, kind: input, shape index: {}]   ;;  %s1135_s3 = inlined_call_operand.vmem [shape: bf16[80,32], index: 3, kind: input, shape index: {}]   ;;  %s1136_s4 = inlined_call_operand.vmem [shape: f32[3,32], index: 4, kind: input, shape index: {}]   ;;  %s1137_s5 = inlined_call_operand.vmem [shape: bf16[32,2], index: 5, kind: input, shape index: {}]   ;;  %s1138_s6 = inlined_call_operand.vmem [shape: f32[1,2], index: 6, kind: input, shape index: {}]   ;;  %s1139_s7 = inlined_call_operand.hbm [shape: f32[2,2], index: 7, kind: output, shape index: {}]  }
   0x1   :  { %v47_v0 = vld [vmem:[%s1132_s0] sm:$0xff]  ;;  %v48_v1 = vld [vmem:[%s1132_s0 + $0x8] sm:$0xff]  ;;  %v49_v2 = vld [vmem:[%s1132_s0 + $0x10] sm:$0xff] }
   0x2   :  { %v55_v3 = vpack.c.bf16 %v48_v1, %v47_v0  ;;  %v50_v4 = vld [vmem:[%s1132_s0 + $0x18] sm:$0xff]  ;;  %v51_v6 = vld [vmem:[%s1132_s0 + $0x20] sm:$0xff]  ;;  %v52_v7 = vld [vmem:[%s1132_s0 + $0x28] sm:$0xff] }
   0x3   :  { %v56_v5 = vpack.c.bf16 %v50_v4, %v49_v2  ;;  %v1021_v8 = vld [vmem:[%s1133_s1] sm:$0xff]   ;;  %v57_v9 = vpack.c.bf16 %v52_v7, %v51_v6  ;;  %v53_v10 = vld [vmem:[%s1132_s0 + $0x30] sm:$0xff]  ;;  %v54_v11 = vld [vmem:[%s1132_s0 + $0x38] sm:$0xff] }
   0x4   :  { %817 = vmatprep.subr.bf16.mxu0 %v55_v3  ;;  %825 = vmatprep.mubr.msk.bf16.mxu0 %vm79_vm0, %v1021_v8  ;;  %v58_v12 = vpack.c.bf16 %v54_v11, %v53_v10 }
   0x5   :  { %818 = vmatpush3.bf16.msra.mxu0 %v55_v3 }
   0x6   :  { %819 = vmatprep.subr.bf16.mxu0 %v56_v5 }
   0x9   :  { %820 = vmatpush3.bf16.msra.mxu0 %v56_v5 }
   0xa   :  { %821 = vmatprep.subr.bf16.mxu0 %v57_v9 }
   0xb   :  { %12 = vsyncpa [#allocation3], 0  ;;  %v1034_v13 = vld [vmem:[%s1133_s1 + $0x8] sm:$0xff]   ;;  %v1039_v14 = vld [vmem:[%s1133_s1 + $0x10] sm:$0xff]   ;;  %vm171_vm1 = vcmask 130048   ;;  %v161_v31 = vlaneseq  ;;  %vm273_vm2 = vcmask 261120  }
   0xc   :  { %v1048_v15 = vld [vmem:[%s1133_s1 + $0x18] sm:$0xff]   ;;  %v926_v16 = vld [vmem:[%s1135_s3] sm:$0xff]   ;;  %v927_v17 = vld [vmem:[%s1135_s3 + $0x8] sm:$0xff]   ;;  %vm958_vm3 = vmmov 0   ;;  %s959_s17 = smov [#allocation2]   ;;  %vm714_vm4 = vcmask 9216  }
   0xd   :  { %822 = vmatpush3.bf16.msra.mxu0 %v57_v9  ;;  %833 = vmatprep.subr.bf16.mxu1 %v926_v16  ;;  %v928_v30 = vld [vmem:[%s1135_s3 + $0x10] sm:$0xff]   ;;  %v1063_v32 = vshrl.u32 %v161_v31, 7  ;;  %v1069_v34 = vld [vmem:[%s1136_s4] sm:$0x7]  ;;  %v929_v0 = vld [vmem:[%s1135_s3 + $0x18] sm:$0xff]   ;;  %s722_s18 = sshll.u32 %s959_s17, 4  ;;  %s723_s18 = int_to_ptr.vmem [resolvable:$true] %s722_s18 }
   0xe   :  { %823 = vmatprep.subr.bf16.mxu0 %v58_v12  ;;  %834 = vmatpush3.bf16.msra.mxu1 %v926_v16  ;;  %p938_p1 = scmp.lt.s32.totalorder %s723_s18, %s723_s18 }
   0xf   :  { %843 = vmatprep.subr.bf16.mxu1 %v927_v17  ;;  %v163_v33 = vsub.s32 0, %v1063_v32 }
  0x11   :  { %824 = vmatpush3.bf16.msra.mxu0 %v58_v12  ;;  %v164_v35 = vrot.slane %v1069_v34, %v163_v33 }
  0x14   :  { %826 = vmatmul.mubr.msk.bf16.vlgmr.msra.gmra.mrb[0].mxu0 %vm79_vm0, %v1034_v13 }
  0x15   :  { %829 = vmatprep.mubr.msk.bf16.mxu0 %vm79_vm0, %v1039_v14 }
  0x1c   :  { %830 = vmatmul.mubr.msk.bf16.gmra.mrb[4].mxu0 %vm79_vm0, %v1048_v15 }
  0x1d   :  { %863 = vmatprep.mubr.msk.bf16.mxu0 %vm79_vm0, %v1021_v8 }
  0xe7   :  { %v827_v18 = vpop.f32.mrb[0].mxu0 }
  0xe8   :  { %v126_v19 = vpop.f32.mrb[1].mxu0 }
  0xe9   :  { %v828_v20 = vpop.f32.mrb[2].mxu0 }
  0xea   :  { %v158_v21 = vpack.c.bf16 %v828_v20, %v827_v18  ;;  %v129_v22 = vpop.f32.mrb[3].mxu0  ;;  %v357_v18 = vsub.s32 1, %v1063_v32 }
  0xeb   :  { %v157_v23 = vpack.c.bf16 %v129_v22, %v126_v19 }
  0xec   :  { %v358_v19 = vrot.slane %v1069_v34, %v357_v18 }
  0xed   :  { %835 = vmatprep.mubr.msk.bf16.mxu1 %vm171_vm1, %v157_v23 }
  0xee   :  { %836 = vmatmul.mubr.msk.bf16.vlgmr.msra.gmra.mrb[0].mxu1 %vm171_vm1, %v158_v21 }
  0xef   :  { %v831_v24 = vpop.f32.mrb[4].mxu0  ;;  %844 = vmatpush3.bf16.msra.mxu1 %v927_v17  ;;  %v930_v17 = vld [vmem:[%s1135_s3 + $0x20] sm:$0xff]  }
  0xf0   :  { %v142_v25 = vpop.f32.mrb[5].mxu0  ;;  %845 = vmatprep.subr.bf16.mxu1 %v928_v30 }
  0xf1   :  { %v832_v26 = vpop.f32.mrb[6].mxu0 }
  0xf2   :  { %v160_v27 = vpack.c.bf16 %v832_v26, %v831_v24  ;;  %v145_v28 = vpop.f32.mrb[7].mxu0 }
  0xf3   :  { %v159_v29 = vpack.c.bf16 %v145_v28, %v142_v25  ;;  %846 = vmatpush3.bf16.msra.mxu1 %v928_v30 }
  0xf4   :  { %871 = vmatprep.subr.bf16.mxu1 %v929_v0 }
  0xf5   :  { %839 = vmatprep.mubr.msk.bf16.mxu1 %vm171_vm1, %v159_v29 }
  0xf6   :  { %840 = vmatmul.mubr.msk.bf16.gmra.mrb[4].mxu1 %vm171_vm1, %v160_v27 }
 0x1c1   :  { %v837_v36 = vpop.f32.mrb[0].mxu1 }
 0x1c2   :  { %v227_v37 = vadd.f32 %v837_v36, %v164_v35  ;;  %v218_v38 = vpop.f32.mrb[1].mxu1 }
 0x1c3   :  { %v219_v39 = vadd.f32 %v218_v38, %v164_v35  ;;  %v838_v40 = vpop.f32.mrb[2].mxu1 }
 0x1c4   :  { %v230_v41 = vadd.f32 %v838_v40, %v164_v35  ;;  %v221_v42 = vpop.f32.mrb[3].mxu1  ;;  %v251_v44 = vmax.f32 %v227_v37, 0.0 }
 0x1c5   :  { %v222_v43 = vadd.f32 %v221_v42, %v164_v35  ;;  %v249_v46 = vmax.f32 %v219_v39, 0.0 }
 0x1c6   :  { %v252_v45 = vmax.f32 %v230_v41, 0.0 }
 0x1c7   :  { %v250_v47 = vmax.f32 %v222_v43, 0.0 }
 0x1c8   :  { %v258_v48 = vpack.c.bf16 %v252_v45, %v251_v44 }
 0x1c9   :  { %v257_v49 = vpack.c.bf16 %v250_v47, %v249_v46  ;;  %v841_v50 = vpop.f32.mrb[4].mxu1 }
 0x1ca   :  { %v243_v51 = vadd.f32 %v841_v50, %v164_v35  ;;  %v234_v52 = vpop.f32.mrb[5].mxu1 }
 0x1cb   :  { %v235_v53 = vadd.f32 %v234_v52, %v164_v35  ;;  %v842_v54 = vpop.f32.mrb[6].mxu1  ;;  %847 = vmatprep.mubr.msk.bf16.mxu1 %vm273_vm2, %v257_v49 }
 0x1cc   :  { %v246_v55 = vadd.f32 %v842_v54, %v164_v35  ;;  %v237_v56 = vpop.f32.mrb[7].mxu1  ;;  %848 = vmatmul.mubr.msk.bf16.vlgmr.msra.gmra.mrb[8].mxu1 %vm273_vm2, %v258_v48  ;;  %v255_v58 = vmax.f32 %v243_v51, 0.0 }
 0x1cd   :  { %v238_v57 = vadd.f32 %v237_v56, %v164_v35  ;;  %v253_v60 = vmax.f32 %v235_v53, 0.0  ;;  %872 = vmatpush3.bf16.msra.mxu1 %v929_v0 }
 0x1ce   :  { %v256_v59 = vmax.f32 %v246_v55, 0.0  ;;  %873 = vmatprep.subr.bf16.mxu1 %v930_v17 }
 0x1cf   :  { %v254_v61 = vmax.f32 %v238_v57, 0.0 }
 0x1d0   :  { %v260_v62 = vpack.c.bf16 %v256_v59, %v255_v58 }
 0x1d1   :  { %v259_v63 = vpack.c.bf16 %v254_v61, %v253_v60  ;;  %874 = vmatpush3.bf16.msra.mxu1 %v930_v17  ;;  %v957_v61 = vmov 0.0  }
 0x1d2   :  { %899 = vmatprep.subr.bf16.mxu1 %v957_v61 }
 0x1d3   :  { %851 = vmatprep.mubr.msk.bf16.mxu1 %vm273_vm2, %v259_v63 }
 0x1d4   :  { %852 = vmatmul.mubr.msk.bf16.gmra.mrb[12].mxu1 %vm273_vm2, %v260_v62  ;;  %v531_v62 = vsub.s32 2, %v1063_v32 }
 0x1d6   :  { %v532_v63 = vrot.slane %v1069_v34, %v531_v62 }
 0x29f   :  { %v849_v1 = vpop.f32.mrb[8].mxu1 }
 0x2a0   :  { %v320_v2 = vpop.f32.mrb[9].mxu1 }
 0x2a1   :  { %v850_v3 = vpop.f32.mrb[10].mxu1 }
 0x2a2   :  { %v352_v4 = vpack.c.bf16 %v850_v3, %v849_v1  ;;  %v323_v5 = vpop.f32.mrb[11].mxu1 }
 0x2a3   :  { %v351_v6 = vpack.c.bf16 %v323_v5, %v320_v2 }
 0x2a5   :  { %855 = vmatprep.subr.bf16.mxu0 %v351_v6 }
 0x2a6   :  { %856 = vmatpush3.bf16.msra.mxu0 %v351_v6 }
 0x2a7   :  { %v853_v7 = vpop.f32.mrb[12].mxu1  ;;  %857 = vmatprep.subr.bf16.mxu0 %v352_v4 }
 0x2a8   :  { %v336_v9 = vpop.f32.mrb[13].mxu1 }
 0x2a9   :  { %v854_v10 = vpop.f32.mrb[14].mxu1 }
 0x2aa   :  { %v354_v11 = vpack.c.bf16 %v854_v10, %v853_v7  ;;  %v339_v12 = vpop.f32.mrb[15].mxu1  ;;  %858 = vmatpush3.bf16.msra.mxu0 %v352_v4 }
 0x2ab   :  { %v353_v16 = vpack.c.bf16 %v339_v12, %v336_v9 }
 0x2ad   :  { %859 = vmatprep.subr.bf16.mxu0 %v353_v16 }
 0x2ae   :  { %860 = vmatpush3.bf16.msra.mxu0 %v353_v16 }
 0x2af   :  { %861 = vmatprep.subr.bf16.mxu0 %v354_v11 }
 0x2b2   :  { %862 = vmatpush3.bf16.msra.mxu0 %v354_v11 }
 0x2b5   :  { %864 = vmatmul.mubr.msk.bf16.vlgmr.msra.gmra.mrb[8].mxu0 %vm79_vm0, %v1034_v13 }
 0x2b6   :  { %867 = vmatprep.mubr.msk.bf16.mxu0 %vm79_vm0, %v1039_v14 }
 0x2bd   :  { %868 = vmatmul.mubr.msk.bf16.gmra.mrb[12].mxu0 %vm79_vm0, %v1048_v15 }
 0x2be   :  { %891 = vmatprep.mubr.msk.bf16.mxu0 %vm79_vm0, %v1021_v8 }
 0x388   :  { %v865_v20 = vpop.f32.mrb[8].mxu0 }
 0x389   :  { %v402_v21 = vadd.f32 %v865_v20, %v358_v19  ;;  %v393_v22 = vpop.f32.mrb[9].mxu0 }
 0x38a   :  { %v394_v23 = vadd.f32 %v393_v22, %v358_v19  ;;  %v866_v24 = vpop.f32.mrb[10].mxu0  ;;  %v932_v22 = vld [vmem:[%s1137_s5 + $0x8] sm:$0xff]  }
 0x38b   :  { %v405_v25 = vadd.f32 %v866_v24, %v358_v19  ;;  %v396_v26 = vpop.f32.mrb[11].mxu0  ;;  %v426_v28 = vmax.f32 %v402_v21, 0.0  ;;  %v931_v21 = vld [vmem:[%s1137_s5] sm:$0xff]   ;;  %s933_s5 = scalar_lea.vmem %s723_s18, 32 }
 0x38c   :  { %v397_v27 = vadd.f32 %v396_v26, %v358_v19  ;;  %v424_v29 = vmax.f32 %v394_v23, 0.0  ;;  %p934_p0 = scmp.ne.s32.totalorder %s723_s18, %s933_s5  ;;  %p939_p2 = scmp.lt.s32.totalorder %s933_s5, %s933_s5 }
 0x38d   :  { %v427_v8 = vmax.f32 %v405_v25, 0.0 }
 0x38e   :  { %v425_v30 = vmax.f32 %v397_v27, 0.0  ;;  %p940_p3 = por %p939_p2, %p938_p1 }
 0x38f   :  { %v433_v31 = vpack.c.bf16 %v427_v8, %v426_v28  ;;  %v764_v28 = vld [vmem:[%s1138_s6] ss:$0 sm:$0xff] }
 0x390   :  { %v432_v33 = vpack.c.bf16 %v425_v30, %v424_v29  ;;  %v869_v35 = vpop.f32.mrb[12].mxu0  ;;  %p941_p4 = pnand %p940_p3, %p934_p0 }
 0x391   :  { %v418_v36 = vadd.f32 %v869_v35, %v358_v19  ;;  %v409_v37 = vpop.f32.mrb[13].mxu0 }
 0x392   :  { %v410_v38 = vadd.f32 %v409_v37, %v358_v19  ;;  %v870_v39 = vpop.f32.mrb[14].mxu0  ;;  %875 = vmatprep.mubr.msk.bf16.mxu1 %vm273_vm2, %v432_v33 }
 0x393   :  { %v421_v40 = vadd.f32 %v870_v39, %v358_v19  ;;  %v412_v41 = vpop.f32.mrb[15].mxu0  ;;  %876 = vmatmul.mubr.msk.bf16.vlgmr.msra.gmra.mrb[16].mxu1 %vm273_vm2, %v433_v31  ;;  %v430_v43 = vmax.f32 %v418_v36, 0.0 }
 0x394   :  { %v413_v42 = vadd.f32 %v412_v41, %v358_v19  ;;  %v428_v45 = vmax.f32 %v410_v38, 0.0  ;;  %v598_v19 = vld [vmem:[%s1134_s2] sm:$0x3] }
 0x395   :  { %v431_v44 = vmax.f32 %v421_v40, 0.0  ;;  %v599_v20 = vpack.c.bf16 %v598_v19, %v598_v19 }
 0x396   :  { %v429_v46 = vmax.f32 %v413_v42, 0.0 }
 0x397   :  { %v435_v47 = vpack.c.bf16 %v431_v44, %v430_v43 }
 0x398   :  { %v434_v48 = vpack.c.bf16 %v429_v46, %v428_v45 }
 0x39a   :  { %879 = vmatprep.mubr.msk.bf16.mxu1 %vm273_vm2, %v434_v48 }
 0x39b   :  { %880 = vmatmul.mubr.msk.bf16.gmra.mrb[20].mxu1 %vm273_vm2, %v435_v47 }
 0x39c   :  { %907 = vmatprep.mubr.msk.bf16.mxu1 %vm958_vm3, %v957_v61 }
 0x466   :  { %v877_v49 = vpop.f32.mrb[16].mxu1 }
 0x467   :  { %v494_v50 = vpop.f32.mrb[17].mxu1 }
 0x468   :  { %v878_v51 = vpop.f32.mrb[18].mxu1 }
 0x469   :  { %v526_v52 = vpack.c.bf16 %v878_v51, %v877_v49  ;;  %v497_v53 = vpop.f32.mrb[19].mxu1 }
 0x46a   :  { %v525_v54 = vpack.c.bf16 %v497_v53, %v494_v50 }
 0x46c   :  { %883 = vmatprep.subr.bf16.mxu0 %v525_v54 }
 0x46d   :  { %884 = vmatpush3.bf16.msra.mxu0 %v525_v54 }
 0x46e   :  { %v881_v55 = vpop.f32.mrb[20].mxu1  ;;  %885 = vmatprep.subr.bf16.mxu0 %v526_v52 }
 0x46f   :  { %v510_v56 = vpop.f32.mrb[21].mxu1 }
 0x470   :  { %v882_v57 = vpop.f32.mrb[22].mxu1 }
 0x471   :  { %v528_v58 = vpack.c.bf16 %v882_v57, %v881_v55  ;;  %v513_v59 = vpop.f32.mrb[23].mxu1  ;;  %886 = vmatpush3.bf16.msra.mxu0 %v526_v52 }
 0x472   :  { %v527_v60 = vpack.c.bf16 %v513_v59, %v510_v56 }
 0x474   :  { %887 = vmatprep.subr.bf16.mxu0 %v527_v60 }
 0x475   :  { %888 = vmatpush3.bf16.msra.mxu0 %v527_v60 }
 0x476   :  { %889 = vmatprep.subr.bf16.mxu0 %v528_v58 }
 0x479   :  { %890 = vmatpush3.bf16.msra.mxu0 %v528_v58 }
 0x47c   :  { %892 = vmatmul.mubr.msk.bf16.vlgmr.msra.gmra.mrb[16].mxu0 %vm79_vm0, %v1034_v13 }
 0x47d   :  { %895 = vmatprep.mubr.msk.bf16.mxu0 %vm79_vm0, %v1039_v14 }
 0x484   :  { %896 = vmatmul.mubr.msk.bf16.gmra.mrb[20].mxu0 %vm79_vm0, %v1048_v15 }
 0x54f   :  { %v893_v0 = vpop.f32.mrb[16].mxu0 }
 0x550   :  { %v567_v1 = vpop.f32.mrb[17].mxu0  ;;  %v576_v3 = vadd.f32 %v893_v0, %v532_v63 }
 0x551   :  { %v894_v2 = vpop.f32.mrb[18].mxu0  ;;  %v568_v5 = vadd.f32 %v567_v1, %v532_v63 }
 0x552   :  { %v579_v13 = vadd.f32 %v894_v2, %v532_v63  ;;  %v570_v4 = vpop.f32.mrb[19].mxu0 }
 0x553   :  { %v571_v14 = vadd.f32 %v570_v4, %v532_v63 }
 0x554   :  { %v601_v6 = vpack.c.bf16 %v579_v13, %v576_v3 }
 0x555   :  { %v600_v7 = vpack.c.bf16 %v571_v14, %v568_v5 }
 0x557   :  { %v897_v15 = vpop.f32.mrb[20].mxu0  ;;  %900 = vmatpush3.bf16.msra.mxu1 %v600_v7 }
 0x558   :  { %v583_v9 = vpop.f32.mrb[21].mxu0  ;;  %901 = vmatprep.subr.bf16.mxu1 %v957_v61  ;;  %v592_v11 = vadd.f32 %v897_v15, %v532_v63 }
 0x559   :  { %v898_v10 = vpop.f32.mrb[22].mxu0  ;;  %v584_v16 = vadd.f32 %v583_v9, %v532_v63 }
 0x55a   :  { %v595_v12 = vadd.f32 %v898_v10, %v532_v63  ;;  %v586_v32 = vpop.f32.mrb[23].mxu0 }
 0x55b   :  { %v587_v34 = vadd.f32 %v586_v32, %v532_v63  ;;  %902 = vmatpush3.bf16.msra.mxu1 %v601_v6 }
 0x55c   :  { %v603_v17 = vpack.c.bf16 %v595_v12, %v592_v11  ;;  %903 = vmatprep.subr.bf16.mxu1 %v957_v61 }
 0x55d   :  { %v602_v18 = vpack.c.bf16 %v587_v34, %v584_v16 }
 0x55f   :  { %904 = vmatpush3.bf16.msra.mxu1 %v602_v18 }
 0x560   :  { %905 = vmatprep.subr.bf16.mxu1 %v957_v61 }
 0x563   :  { %906 = vmatpush3.bf16.msra.mxu1 %v603_v17 }
 0x564   :  { %911 = vmatprep.subr.bf16.mxu1 %v957_v61 }
 0x566   :  { %908 = vmatmul.mubr.msk.bf16.vlgmr.msra.gmra.mrb[24].mxu1 %vm79_vm0, %v599_v20 }
 0x567   :  { %912 = vmatpush3.bf16.msra.mxu1 %v931_v21  ;;  %915 = vmatprep.mubr.msk.bf16.mxu1 %vm958_vm3, %v957_v61 }
 0x568   :  { %913 = vmatprep.subr.bf16.mxu1 %v957_v61 }
 0x56b   :  { %914 = vmatpush3.bf16.msra.mxu1 %v932_v22 }
 0x639   :  { %v641_v23 = vpop.f32.mrb[24].mxu1 }
 0x63a   :  { %v647_v24 = vpack.c.bf16 %v641_v23, %v641_v23  ;;  %v909_v25 = vpop.f32.mrb[25].mxu1 }
 0x63b   :  { %v644_v26 = vpop.f32.mrb[26].mxu1 }
 0x63c   :  { %v910_v27 = vpop.f32.mrb[27].mxu1  ;;  %916 = vmatmul.mubr.msk.bf16.vlgmr.msra.gmra.mrb[28].mxu1 %vm273_vm2, %v647_v24 }
 0x70f   :  { %v708_v8 = vpop.f32.mrb[28].mxu1 }
 0x710   :  { %v709_v29 = vadd.f32 %v764_v28, %v708_v8  ;;  %v917_v30 = vpop.f32.mrb[29].mxu1 }
 0x711   :  { %v711_v31 = vpop.f32.mrb[30].mxu1 }
 0x712   :  { %v918_v33 = vpop.f32.mrb[31].mxu1  ;;  %715 = vst.msk [vmem:[#allocation2] sm:$0x3] %vm714_vm4, %v709_v29 }
 0x713   :  { %944 = shalt.err (!%p941_p4)
}
 0x714   :  { %s945_s6 = scalar_lea.hbm %s1139_s7, 32 }
 0x715   :  { %p946_p5 = scmp.ne.s32.totalorder %s1139_s7, %s945_s6  ;;  %p949_p6 = scmp.lt.u32.totalorder %s945_s6, %s1139_s7 }
 0x717   :  { %p951_p7 = pnand %p949_p6, %p946_p5 }
 0x719   :  { %954 = shalt.err (!%p951_p7)
}
 0x71a   :  { %725 = dma.vmem_to_hbm [thread:$0]  %s723_s18, 32, %s1139_s7, [#allocation3]  }
 0x71b   :  { %955 = dma.done.wait [#allocation3], 32  }
 0x71c   :  { %956 = vsyncadd [#allocation3], 4294967264 }
 0x71d   :  { %729 = vsyncpa [#allocation3], 1 }

</bundles_post_ra>
